<compile_context>
chip_gen: v7x
topology: tpu7x:2x2x1
jax: 0.10.0
libtpu: 0.0.40
codegen_flags: <defaults>
</compile_context>

<pallas_src>
import math

import jax
import jax.numpy as jnp
from jax.experimental import pallas as pl
from jax.experimental.pallas import tpu as pltpu


# ---------------------------------------------------------------------------
# Kernels
# ---------------------------------------------------------------------------
def ffn_kernel_accout(x_ref, w1_ref, b1_ref, w2_ref, b2_ref, o_ref):
    """float32 output: accumulate directly into the resident output block."""
    h_idx = pl.program_id(1)

    @pl.when(h_idx == 0)
    def _init():
        o_ref[...] = jnp.broadcast_to(
            b2_ref[...].astype(o_ref.dtype), o_ref.shape)

    # First linear: MXU on native-dtype operands, f32 accumulation.
    h = jnp.dot(x_ref[...], w1_ref[...], preferred_element_type=jnp.float32)
    h = h + b1_ref[...].astype(jnp.float32)
    # SiLU in f32 (elementwise -> exact per hidden block).
    h = h * jax.nn.sigmoid(h)
    # Second linear: feed the MXU in the weight dtype, accumulate in f32.
    o_ref[...] += jnp.dot(h.astype(w2_ref.dtype), w2_ref[...],
                          preferred_element_type=jnp.float32)


def ffn_kernel_scratch(x_ref, w1_ref, b1_ref, w2_ref, b2_ref, o_ref, acc_ref):
    """Non-f32 output: accumulate in an f32 VMEM scratch, cast at the end."""
    h_idx = pl.program_id(1)

    @pl.when(h_idx == 0)
    def _init():
        acc_ref[...] = jnp.zeros_like(acc_ref)

    h = jnp.dot(x_ref[...], w1_ref[...], preferred_element_type=jnp.float32)
    h = h + b1_ref[...].astype(jnp.float32)
    h = h * jax.nn.sigmoid(h)
    acc_ref[...] += jnp.dot(h.astype(w2_ref.dtype), w2_ref[...],
                            preferred_element_type=jnp.float32)

    @pl.when(h_idx == pl.num_programs(1) - 1)
    def _finalize():
        out = acc_ref[...] + b2_ref[...].astype(jnp.float32)
        o_ref[...] = out.astype(o_ref.dtype)


# ---------------------------------------------------------------------------
# Tile-size / VMEM helpers
# ---------------------------------------------------------------------------
def _hw_info():
    kind = ""
    try:
        kind = jax.devices()[0].device_kind.lower()
    except Exception:
        pass
    vmem_cap = None
    try:
        vmem_cap = int(pltpu.get_tpu_info().vmem_capacity_bytes)
    except Exception:
        vmem_cap = None
    if not vmem_cap or vmem_cap <= 0:
        vmem_cap = (64 << 20) if "v7" in kind else (128 << 20)
    return kind, vmem_cap


def _nbytes(shape, dtype):
    return math.prod(shape) * jnp.dtype(dtype).itemsize


def _footprint(tm, th, dim, x_dt, w_dt, o_dt, use_acc, wbuf):
    """VMEM footprint of one pipelined step (buffers + scratch + h temp)."""
    total = 2 * _nbytes((tm, dim), x_dt)                    # x tile
    total += wbuf * _nbytes((dim, th), w_dt)                # W1 slab
    total += wbuf * _nbytes((th, dim), w_dt)                # W2 slab
    total += 2 * (_nbytes((1, th), w_dt) + _nbytes((1, dim), w_dt))
    total += 2 * _nbytes((tm, dim), o_dt)                   # output tile
    if use_acc:
        total += _nbytes((tm, dim), jnp.float32)            # f32 accumulator
    # in-kernel intermediate h (f32) + its cast feeding the 2nd matmul
    total += _nbytes((tm, th), jnp.float32) + _nbytes((tm, th), w_dt)
    return total


def _tm_target(kind, w_itemsize):
    """Roofline-derived token tile so weight streaming stays below MXU cost."""
    if "v5" in kind:
        base = 256
    elif "v7" in kind:
        base = 512
    elif "v6" in kind:
        base = 1024
    else:
        base = 512
    # Targets above were derived for 2-byte weights; widen proportionally.
    return base * max(1, w_itemsize // 2)


def _choose_tm(m, target):
    """Token tile; prefers divisors of m (no pad/slice HBM round trips)."""
    target = max(8, target)
    if m <= target:
        return m
    for align in (256, 8):
        t = (target // align) * align
        while t >= align and t * 2 >= target:
            if m % t == 0:
                return t
            t -= align
    return target  # ragged tail -> token axis gets zero-padded


def _choose_th(hidden, fits):
    """Hidden slab size; pads hidden up to a multiple of th when needed."""
    if hidden <= 2048 and fits(hidden):
        return hidden, hidden                       # single reduction step
    th = max(256, min(2048, (hidden // 256) * 256))
    while th > 256 and not fits(th):
        th -= 256
    hidden_pad = pl.cdiv(hidden, th) * th
    return th, hidden_pad


# ---------------------------------------------------------------------------
# Wrapper
# ---------------------------------------------------------------------------
def feed_forward(x, w1, b1, w2, b2, *, tm=None, th=None, vmem_limit_bytes=None):
    """x: (..., dim) -> (..., dim). Flattens leading dims into a token axis."""
    orig_shape = x.shape
    dim = orig_shape[-1]
    hidden = w1.shape[1]
    x2d = x.reshape(-1, dim)
    m = x2d.shape[0]

    kind, vmem_cap = _hw_info()
    out_dtype = x.dtype
    use_acc = out_dtype != jnp.float32              # f32 out -> accumulate in o_ref
    w_itemsize = jnp.dtype(w1.dtype).itemsize
    wbuf = 3 if "v5" in kind else 2                 # v5e: triple-buffered weights
    budget = int(0.85 * vmem_cap)

    # ---- token tile from the roofline ----
    if tm is None:
        tm = _choose_tm(m, _tm_target(kind, w_itemsize))
    tm = min(tm, m)

    # If even a 256-wide hidden slab cannot fit VMEM, shrink the token tile.
    if th is None:
        while tm > 256 and _footprint(tm, min(hidden, 256), dim, x2d.dtype,
                                      w1.dtype, out_dtype, use_acc,
                                      wbuf) > budget:
            tm = max(256, tm // 2)

    m_pad = pl.cdiv(m, tm) * tm

    # v7x megacore: make sure the "parallel" token axis has >= 2 tiles.
    if "v7" in kind and m_pad // tm == 1 and tm >= 512 and tm % 16 == 0 \
            and m_pad % (tm // 2) == 0:
        tm //= 2

    # ---- hidden slab solved against real VMEM capacity ----
    def fits(th_candidate):
        return _footprint(tm, th_candidate, dim, x2d.dtype, w1.dtype,
                          out_dtype, use_acc, wbuf) <= budget

    if th is None:
        th, hidden_pad = _choose_th(hidden, fits)
    else:
        th = min(th, hidden)
        hidden_pad = pl.cdiv(hidden, th) * th

    # ---- padding (token tail + hidden axis of the weights) ----
    if m_pad != m:
        x2d = jnp.pad(x2d, ((0, m_pad - m), (0, 0)))
    if hidden_pad != hidden:
        # Zero padding is exactly neutral: SiLU(0)=0 and the padded W2 rows
        # are zero, so padded hidden units contribute nothing.
        w1 = jnp.pad(w1, ((0, 0), (0, hidden_pad - hidden)))
        b1 = jnp.pad(b1, ((0, 0), (0, hidden_pad - hidden)))
        w2 = jnp.pad(w2, ((0, hidden_pad - hidden), (0, 0)))

    grid = (m_pad // tm, hidden_pad // th)
    n_tok_tiles, n_h_steps = grid

    # ---- VMEM budget: real footprint + headroom, clamped to physical cap ----
    if vmem_limit_bytes is None:
        fp = _footprint(tm, th, dim, x2d.dtype, w1.dtype, out_dtype,
                        use_acc, wbuf)
        vmem_limit_bytes = min(vmem_cap, max(32 << 20, int(fp * 1.15)))

    # Weights are re-streamed once per token tile.
    cost = pl.CostEstimate(
        flops=4 * m_pad * dim * hidden_pad,
        transcendentals=m_pad * hidden_pad,
        bytes_accessed=(_nbytes((m_pad, dim), x2d.dtype)
                        + _nbytes((m_pad, dim), out_dtype)
                        + n_tok_tiles * (_nbytes(w1.shape, w1.dtype)
                                         + _nbytes(w2.shape, w2.dtype)
                                         + _nbytes(b1.shape, b1.dtype)
                                         + _nbytes(b2.shape, b2.dtype))),
    )

    def _weight_spec(block_shape, index_map):
        # v5e only: deeper buffering on the weight slabs (DMA jitter hiding).
        if wbuf > 2 and n_h_steps > 2:
            try:
                return pl.BlockSpec(block_shape, index_map,
                                    pipeline_mode=pl.Buffered(wbuf))
            except TypeError:  # older jax without pipeline_mode kwarg
                pass
        return pl.BlockSpec(block_shape, index_map)

    in_specs = [
        pl.BlockSpec((tm, dim), lambda i, h: (i, 0)),       # x tile
        _weight_spec((dim, th), lambda i, h: (0, h)),       # W1 hidden slab
        pl.BlockSpec((1, th), lambda i, h: (0, h)),         # b1 hidden slab
        _weight_spec((th, dim), lambda i, h: (h, 0)),       # W2 hidden slab
        pl.BlockSpec((1, dim), lambda i, h: (0, 0)),        # b2
    ]
    out_spec = pl.BlockSpec((tm, dim), lambda i, h: (i, 0))

    if use_acc:
        kernel = ffn_kernel_scratch
        scratch = [pltpu.VMEM((tm, dim), jnp.float32)]
    else:
        kernel = ffn_kernel_accout
        scratch = []

    out = pl.pallas_call(
        kernel,
        out_shape=jax.ShapeDtypeStruct((m_pad, dim), out_dtype),
        grid_spec=pltpu.PrefetchScalarGridSpec(
            num_scalar_prefetch=0,
            grid=grid,
            in_specs=in_specs,
            out_specs=out_spec,
            scratch_shapes=scratch,
        ),
        compiler_params=pltpu.CompilerParams(
            dimension_semantics=("parallel", "arbitrary"),
            vmem_limit_bytes=int(vmem_limit_bytes),
        ),
        cost_estimate=cost,
    )(x2d, w1, b1, w2, b2)

    if m_pad != m:
        out = out[:m]
    return out.reshape(orig_shape)


# ---------------------------------------------------------------------------
# Params / reference
# ---------------------------------------------------------------------------
def init_params(key, dim, hidden_dim, dtype=jnp.float32):
    """Deterministic init mirroring nn.Linear default (U(-1/sqrt(fan_in), +))."""
    k1, k2, k3, k4 = jax.random.split(key, 4)
    bound1 = 1.0 / math.sqrt(dim)
    bound2 = 1.0 / math.sqrt(hidden_dim)
    # Stored already transposed to [in, out] for the kernel.
    w1 = jax.random.uniform(k1, (dim, hidden_dim), dtype, -bound1, bound1)
    b1 = jax.random.uniform(k2, (1, hidden_dim), dtype, -bound1, bound1)
    w2 = jax.random.uniform(k3, (hidden_dim, dim), dtype, -bound2, bound2)
    b2 = jax.random.uniform(k4, (1, dim), dtype, -bound2, bound2)
    return w1, b1, w2, b2


def feed_forward_ref(x, w1, b1, w2, b2):
    h = x @ w1 + b1[0]
    h = h * jax.nn.sigmoid(h)
    return h @ w2 + b2[0]


if __name__ == "__main__":
    batch, seq, dim, hidden_dim = 2, 8, 32, 64

    key = jax.random.PRNGKey(0)
    kx, kp = jax.random.split(key)
    x = jax.random.normal(kx, (batch, seq, dim), dtype=jnp.float32)
    w1, b1, w2, b2 = init_params(kp, dim, hidden_dim)

    out = feed_forward(x, w1, b1, w2, b2)
    out = jax.block_until_ready(out)

    ref = feed_forward_ref(x.reshape(-1, dim), w1, b1, w2, b2).reshape(x.shape)
    assert out.shape == x.shape
    assert jnp.allclose(out, ref, atol=1e-5, rtol=1e-5), "mismatch vs reference"

    print("KERNEL_OK")
</pallas_src>

<mosaic_0001>
module attributes {stable_mosaic.version = 11 : i64} {
  func.func @ffn_kernel_accout(%arg0: i32, %arg1: i32, %arg2: memref<16x32xf32, #tpu.memory_space<vmem>>, %arg3: memref<32x64xf32, #tpu.memory_space<vmem>>, %arg4: memref<1x64xf32, #tpu.memory_space<vmem>>, %arg5: memref<64x32xf32, #tpu.memory_space<vmem>>, %arg6: memref<1x32xf32, #tpu.memory_space<vmem>>, %arg7: memref<16x32xf32, #tpu.memory_space<vmem>>) attributes {dimension_semantics = [#tpu.dimension_semantics<parallel>, #tpu.dimension_semantics<arbitrary>], iteration_bounds = array<i64: 1, 1>, scalar_prefetch = 0 : i64, scratch_operands = 0 : i64, tpu.core_type = #tpu.core_type<tc>, window_params = [{transform_indices = @transform_0, window_bounds = array<i64: 16, 32>}, {transform_indices = @transform_1, window_bounds = array<i64: 32, 64>}, {transform_indices = @transform_2, window_bounds = array<i64: 1, 64>}, {transform_indices = @transform_3, window_bounds = array<i64: 64, 32>}, {pipeline_mode = #tpu.pipeline_mode<synchronous>, transform_indices = @transform_4, window_bounds = array<i64: 1, 32>}, {transform_indices = @transform_5, window_bounds = array<i64: 16, 32>}]} {
    %c0_i32 = arith.constant 0 : i32
    %0 = arith.cmpi eq, %arg1, %c0_i32 : i32
    %1 = arith.extui %0 : i1 to i32
    %c0_i32_0 = arith.constant 0 : i32
    %2 = arith.cmpi ne, %1, %c0_i32_0 : i32
    scf.if %2 {
      %c0_14 = arith.constant 0 : index
      %c0_15 = arith.constant 0 : index
      %20 = vector.load %arg6[%c0_14, %c0_15] : memref<1x32xf32, #tpu.memory_space<vmem>>, vector<1x32xf32>
      %21 = vector.shape_cast %20 : vector<1x32xf32> to vector<1x32xf32>
      %22 = vector.broadcast %21 : vector<1x32xf32> to vector<16x32xf32>
      %c0_16 = arith.constant 0 : index
      %c0_17 = arith.constant 0 : index
      %23 = vector.load %arg7[%c0_16, %c0_17] : memref<16x32xf32, #tpu.memory_space<vmem>>, vector<16x32xf32>
      tpu.vector_store %arg7[%c0_16, %c0_17], %22 {strides = array<i32>} : memref<16x32xf32, #tpu.memory_space<vmem>>, vector<16x32xf32>,
    } else {
    }
    %c0 = arith.constant 0 : index
    %c0_1 = arith.constant 0 : index
    %3 = vector.load %arg2[%c0, %c0_1] : memref<16x32xf32, #tpu.memory_space<vmem>>, vector<16x32xf32>
    %c0_2 = arith.constant 0 : index
    %c0_3 = arith.constant 0 : index
    %4 = vector.load %arg3[%c0_2, %c0_3] : memref<32x64xf32, #tpu.memory_space<vmem>>, vector<32x64xf32>
    %cst = arith.constant dense<0.000000e+00> : vector<16x64xf32>
    %5 = tpu.matmul %3, %4, %cst {dimension_numbers = #tpu.dot_dimension_numbers<[1], [0], [0], [1], [0, 0, 1, 1], [], []>} : vector<16x32xf32>, vector<32x64xf32>, vector<16x64xf32> -> vector<16x64xf32>
    %c0_4 = arith.constant 0 : index
    %c0_5 = arith.constant 0 : index
    %6 = vector.load %arg4[%c0_4, %c0_5] : memref<1x64xf32, #tpu.memory_space<vmem>>, vector<1x64xf32>
    %7 = vector.broadcast %6 : vector<1x64xf32> to vector<16x64xf32>
    %8 = arith.addf %5, %7 : vector<16x64xf32>
    %9 = arith.negf %8 : vector<16x64xf32>
    %10 = math.exp %9 : vector<16x64xf32>
    %cst_6 = arith.constant 1.000000e+00 : f32
    %11 = vector.broadcast %cst_6 : f32 to vector<16x64xf32>
    %12 = arith.addf %11, %10 : vector<16x64xf32>
    %13 = arith.divf %11, %12 : vector<16x64xf32>
    %14 = arith.mulf %8, %13 : vector<16x64xf32>
    %c0_7 = arith.constant 0 : index
    %c0_8 = arith.constant 0 : index
    %15 = vector.load %arg7[%c0_7, %c0_8] : memref<16x32xf32, #tpu.memory_space<vmem>>, vector<16x32xf32>
    %c0_9 = arith.constant 0 : index
    %c0_10 = arith.constant 0 : index
    %16 = vector.load %arg5[%c0_9, %c0_10] : memref<64x32xf32, #tpu.memory_space<vmem>>, vector<64x32xf32>
    %cst_11 = arith.constant dense<0.000000e+00> : vector<16x32xf32>
    %17 = tpu.matmul %14, %16, %cst_11 {dimension_numbers = #tpu.dot_dimension_numbers<[1], [0], [0], [1], [0, 0, 1, 1], [], []>} : vector<16x64xf32>, vector<64x32xf32>, vector<16x32xf32> -> vector<16x32xf32>
    %18 = arith.addf %15, %17 : vector<16x32xf32>
    %c0_12 = arith.constant 0 : index
    %c0_13 = arith.constant 0 : index
    %19 = vector.load %arg7[%c0_12, %c0_13] : memref<16x32xf32, #tpu.memory_space<vmem>>, vector<16x32xf32>
    tpu.vector_store %arg7[%c0_12, %c0_13], %18 {strides = array<i32>} : memref<16x32xf32, #tpu.memory_space<vmem>>, vector<16x32xf32>,
    return
  }
  func.func @transform_0(%arg0: i32, %arg1: i32) -> (i32, i32) {
    %c0_i32 = arith.constant 0 : i32
    %c0_i32_0 = arith.constant 0 : i32
    return %arg0, %c0_i32 : i32, i32
  }
  func.func @transform_1(%arg0: i32, %arg1: i32) -> (i32, i32) {
    %c0_i32 = arith.constant 0 : i32
    %c0_i32_0 = arith.constant 0 : i32
    return %c0_i32, %arg1 : i32, i32
  }
  func.func @transform_2(%arg0: i32, %arg1: i32) -> (i32, i32) {
    %c0_i32 = arith.constant 0 : i32
    %c0_i32_0 = arith.constant 0 : i32
    return %c0_i32, %arg1 : i32, i32
  }
  func.func @transform_3(%arg0: i32, %arg1: i32) -> (i32, i32) {
    %c0_i32 = arith.constant 0 : i32
    %c0_i32_0 = arith.constant 0 : i32
    return %arg1, %c0_i32 : i32, i32
  }
  func.func @transform_4(%arg0: i32, %arg1: i32) -> (i32, i32) {
    %c0_i32 = arith.constant 0 : i32
    %c0_i32_0 = arith.constant 0 : i32
    %c0_i32_1 = arith.constant 0 : i32
    return %c0_i32, %c0_i32_0 : i32, i32
  }
  func.func @transform_5(%arg0: i32, %arg1: i32) -> (i32, i32) {
    %c0_i32 = arith.constant 0 : i32
    %c0_i32_0 = arith.constant 0 : i32
    return %arg0, %c0_i32 : i32, i32
  }
}

</mosaic_0001>

<bundles_post_ra>
// kernel: tpu_custom_call.1
= control target key start
LH: loop header
LB: loop body
LE: loop exit
PB: predicated region body
PF: predicated region fallthrough
CT: control target
= control target key end

     0   :  { %vm32_vm0 = vcmask 261120   ;;  %s468_s0 = inlined_call_operand.vmem [shape: f32[16,32], index: 0, kind: input, shape index: {}]   ;;  %s469_s1 = inlined_call_operand.vmem [shape: f32[32,64], index: 1, kind: input, shape index: {}]   ;;  %s470_s2 = inlined_call_operand.vmem [shape: f32[1,64], index: 2, kind: input, shape index: {}]   ;;  %s471_s3 = inlined_call_operand.vmem [shape: f32[64,32], index: 3, kind: input, shape index: {}]   ;;  %s472_s4 = inlined_call_operand.vmem [shape: f32[1,32], index: 4, kind: input, shape index: {}]   ;;  %s473_s5 = inlined_call_operand.hbm [shape: f32[16,32], index: 5, kind: output, shape index: {}]  }
   0x1   :  { %v37_v0 = vld [vmem:[%s469_s1] sm:$0xff]  ;;  %v38_v1 = vld [vmem:[%s469_s1 + $0x8] sm:$0xff]  ;;  %v39_v2 = vld [vmem:[%s469_s1 + $0x10] sm:$0xff] }
   0x2   :  { %v310_v3 = vpack.c.bf16 %v38_v1, %v37_v0  ;;  %v40_v4 = vld [vmem:[%s469_s1 + $0x18] sm:$0xff]  ;;  %v35_v5 = vld [vmem:[%s468_s0] sm:$0xff] }
   0x3   :  { %v314_v6 = vpack.c.bf16 %v40_v4, %v39_v2  ;;  %288 = vmatprep.mubr.msk.f32.mxu0 %vm32_vm0, %v35_v5 }
   0x4   :  { %10 = vsyncpa [#allocation3], 0  ;;  %311 = vmatprep.subr.bf16.mxu0 %v310_v3  ;;  %v36_v7 = vld [vmem:[%s468_s0 + $0x8] sm:$0xff]  ;;  %v146_v8 = vld [vmem:[%s471_s3] sm:$0xff]  ;;  %vm154_vm1 = vcmask 523264  }
   0x5   :  { %313 = vmatpush3.bf16.msra.mxu0 %v310_v3  ;;  %v147_v9 = vld [vmem:[%s471_s3 + $0x8] sm:$0xff]  ;;  %v148_v11 = vld [vmem:[%s471_s3 + $0x10] sm:$0xff]  ;;  %v149_v12 = vld [vmem:[%s471_s3 + $0x18] sm:$0xff] }
   0x6   :  { %315 = vmatprep.subr.bf16.mxu0 %v314_v6  ;;  %v318_v10 = vpack.c.bf16 %v147_v9, %v146_v8  ;;  %v322_v13 = vpack.c.bf16 %v149_v12, %v148_v11  ;;  %v150_v14 = vld [vmem:[%s471_s3 + $0x20] sm:$0xff]  ;;  %v151_v15 = vld [vmem:[%s471_s3 + $0x28] sm:$0xff]  ;;  %v152_v17 = vld [vmem:[%s471_s3 + $0x30] sm:$0xff] }
   0x7   :  { %v326_v16 = vpack.c.bf16 %v151_v15, %v150_v14  ;;  %v153_v18 = vld [vmem:[%s471_s3 + $0x38] sm:$0xff]  ;;  %v256_v20 = vld [vmem:[%s472_s4] ss:$0 sm:$0xff] }
   0x8   :  { %319 = vmatprep.subr.bf16.mxu1 %v318_v10  ;;  %v330_v19 = vpack.c.bf16 %v153_v18, %v152_v17  ;;  %34 = vst.msk [vmem:[#allocation2 + $0x8] sm:$0xff] %vm32_vm0, %v256_v20  ;;  %33 = vst.msk [vmem:[#allocation2] sm:$0xff] %vm32_vm0, %v256_v20  ;;  %v257_v21 = vld [vmem:[%s470_s2] ss:$0 sm:$0xff]  ;;  %s369_s2 = smov [#allocation2]  }
   0x9   :  { %317 = vmatpush3.bf16.msra.mxu0 %v314_v6  ;;  %321 = vmatpush3.bf16.msra.mxu1 %v318_v10  ;;  %s245_s3 = sshll.u32 %s369_s2, 4  ;;  %s246_s3 = int_to_ptr.vmem [resolvable:$true] %s245_s3 }
   0xa   :  { %323 = vmatprep.subr.bf16.mxu1 %v322_v13  ;;  %s345_s4 = scalar_lea.vmem %s246_s3, 256  ;;  %p350_p1 = scmp.lt.s32.totalorder %s246_s3, %s246_s3 }
   0xb   :  { %p346_p0 = scmp.ne.s32.totalorder %s246_s3, %s345_s4  ;;  %p351_p2 = scmp.lt.s32.totalorder %s345_s4, %s345_s4 }
   0xc   :  { %289 = vmatmul.mubr.msk.f32.vlgmr.msra.gmra.mrb[0].mxu0 %vm32_vm0, %v36_v7 }
   0xd   :  { %325 = vmatpush3.bf16.msra.mxu1 %v322_v13  ;;  %p352_p3 = por %p351_p2, %p350_p1 }
   0xe   :  { %327 = vmatprep.subr.bf16.mxu1 %v326_v16 }
   0xf   :  { %v145_v36 = vld [vmem:[#allocation2 + $0x8] sm:$0xff]  ;;  %v144_v37 = vld [vmem:[#allocation2] sm:$0xff]  ;;  %p353_p4 = pnand %p352_p3, %p346_p0 }
  0x11   :  { %329 = vmatpush3.bf16.msra.mxu1 %v326_v16 }
  0x12   :  { %331 = vmatprep.subr.bf16.mxu1 %v330_v19 }
  0x15   :  { %333 = vmatpush3.bf16.msra.mxu1 %v330_v19 }
  0xdf   :  { %v290_v22 = vpop.f32.mrb[0].mxu0 }
  0xe0   :  { %v127_v23 = vadd.f32 %v290_v22, %v257_v21  ;;  %v121_v24 = vpop.f32.mrb[1].mxu0 }
  0xe1   :  { %v122_v25 = vadd.f32 %v257_v21, %v121_v24 }
  0xe2   :  { %v261_v26 = vmul.f32 -1.442695, %v127_v23 }
  0xe3   :  { %v260_v27 = vmul.f32 -1.442695, %v122_v25 }
  0xe4   :  { %337 = vpow2.f32 %v261_v26 }
  0xe5   :  { %339 = vpow2.f32 %v260_v27 }
  0xee   :  { %v338_v28 = vpop.eup %337 }
  0xef   :  { %v340_v29 = vpop.eup %339  ;;  %v137_v30 = vadd.f32 1.0, %v338_v28 }
  0xf0   :  { %v136_v31 = vadd.f32 1.0, %v340_v29 }
  0xf1   :  { %341 = vrcp.f32 %v137_v30 }
  0xf2   :  { %343 = vrcp.f32 %v136_v31 }
  0xfb   :  { %v342_v32 = vpop.eup %341 }
  0xfc   :  { %v344_v33 = vpop.eup %343  ;;  %v143_v35 = vmul.f32 %v342_v32, %v127_v23 }
  0xfd   :  { %v142_v34 = vmul.f32 %v344_v33, %v122_v25 }
  0xff   :  { %307 = vmatprep.mubr.msk.f32.mxu1 %vm154_vm1, %v142_v34 }
 0x100   :  { %308 = vmatmul.mubr.msk.f32.vlgmr.msra.gmra.mrb[0].mxu1 %vm154_vm1, %v143_v35 }
 0x1d3   :  { %v309_v38 = vpop.f32.mrb[0].mxu1 }
 0x1d4   :  { %v237_v39 = vadd.f32 %v309_v38, %v145_v36  ;;  %v227_v40 = vpop.f32.mrb[1].mxu1 }
 0x1d5   :  { %v236_v41 = vadd.f32 %v227_v40, %v144_v37 }
 0x1d6   :  { %239 = vst.msk [vmem:[#allocation2 + $0x8] sm:$0xff] %vm32_vm0, %v237_v39 }
 0x1d7   :  { %238 = vst.msk [vmem:[#allocation2] sm:$0xff] %vm32_vm0, %v236_v41 }
 0x1d8   :  { %356 = shalt.err (!%p353_p4)
}
 0x1d9   :  { %s357_s25 = scalar_lea.hbm %s473_s5, 256 }
 0x1da   :  { %p358_p5 = scmp.ne.s32.totalorder %s473_s5, %s357_s25  ;;  %p361_p6 = scmp.lt.u32.totalorder %s357_s25, %s473_s5 }
 0x1dc   :  { %p363_p7 = pnand %p361_p6, %p358_p5 }
 0x1de   :  { %366 = shalt.err (!%p363_p7)
}
 0x1df   :  { %s370_s30 = smov 128   ;;  %s371_s1 = smov 8  }
 0x1e0   :  { %251 = dma.vmem_to_hbm [thread:$0]  %s246_s3, 256, %s473_s5, [#allocation3], %s370_s30, %s370_s30, %s371_s1  }
 0x1e1   :  { %367 = dma.done.wait [#allocation3], 256  }
 0x1e2   :  { %368 = vsyncadd [#allocation3], 4294967040 }
 0x1e3   :  { %255 = vsyncpa [#allocation3], 1 }

</bundles_post_ra>
